<compile_context>
chip_gen: v6e
topology: v6e:2x2x1
jax: 0.10.0
libtpu: 0.0.40
codegen_flags: <defaults>
</compile_context>

<pallas_src>
import jax
import jax.numpy as jnp
import numpy as np
from jax.experimental import pallas as pl
from jax.experimental.pallas import tpu as pltpu

N_FFT = 111
HOP = 111                      # overlap = 0 -> hop_length = n_fft
N_FREQ = N_FFT // 2 + 1        # 56 onesided rFFT bins
ALPHA = 1.0
EPS = 1e-7
EPS_SQ = EPS * EPS

K_PAD = 128                    # contraction dim padded 111 -> 128 (zero rows)
LANES = 128                    # packed cos|sin lane width
SIN_OFFSET = 64                # sin coefficients live in lanes [64, 64 + 56)


def _cdiv(a, b):
    return -(-a // b)


def _round_up(a, b):
    return _cdiv(a, b) * b


def _packed_dft_constant():
    """bf16 (128, 128): rows 0..110 hold win*cos*inv_norm in lanes 0..55 and
    win*sin*inv_norm in lanes 64..119; all other entries exactly 0."""
    k = np.arange(N_FFT, dtype=np.float64)
    win = 0.5 * (1.0 - np.cos(2.0 * np.pi * k / N_FFT))       # periodic Hann
    inv_norm = 1.0 / np.sqrt(np.sum(win * win))               # normalized=True
    f = np.arange(N_FREQ, dtype=np.float64)
    ang = 2.0 * np.pi * np.outer(k, f) / N_FFT
    cs = np.zeros((K_PAD, LANES), dtype=np.float32)
    cs[:N_FFT, :N_FREQ] = win[:, None] * np.cos(ang) * inv_norm
    cs[:N_FFT, SIN_OFFSET:SIN_OFFSET + N_FREQ] = win[:, None] * np.sin(ang) * inv_norm
    return jnp.asarray(cs, dtype=jnp.bfloat16)


def _make_kernel(bt, f_pad):
    """One grid step: `bt` batch elements, LHS rows = 2 * bt * f_pad
    (x_true rows followed by x_pred rows)."""
    rows = bt * f_pad

    def kernel(x_ref, cs_ref, out_ref):
        cs = cs_ref[...]                                        # (128, 128) bf16
        # Single MXU matmul for both signals (one RHS weight push per step).
        p = jnp.dot(x_ref[...], cs, preferred_element_type=jnp.float32)  # (2*rows, 128)

        # |X|^2 = Re^2 + Im^2 via a half-width lane rotation (XLU slot).
        p2 = p * p
        q = p2 + pltpu.roll(p2, shift=SIN_OFFSET, axis=1) + EPS_SQ
        # Lanes 64..119 now duplicate lanes 0..55 exactly (2x handled in the
        # wrapper); junk lanes / zero-padded frames hold EPS_SQ for both
        # signals -> exactly-zero diff / log contributions.

        qt = q[:rows]                                           # sublane-aligned views
        qp = q[rows:]

        a = qt + qp                                             # (St^2+e) + (Sp^2+e)
        r = jnp.sqrt(qt * qp)                                   # one sqrt per element
        l1 = jnp.abs(jnp.log(qt) - jnp.log(qp))                 # = 2*|log St - log Sp|

        shape3 = (bt, f_pad, LANES)                             # per-batch frame sums
        out_ref[:, 0:LANES] = jnp.sum(a.reshape(shape3), axis=1)
        out_ref[:, LANES:2 * LANES] = jnp.sum(r.reshape(shape3), axis=1)
        out_ref[:, 2 * LANES:3 * LANES] = jnp.sum(l1.reshape(shape3), axis=1)

    return kernel


def _chip_config():
    """Trace-time hardware query with conservative fallbacks."""
    vmem_bytes = None
    try:
        info = pltpu.get_tpu_info()
        vmem_bytes = getattr(info, "vmem_capacity_bytes", None)
    except Exception:
        vmem_bytes = None
    if not vmem_bytes:
        vmem_bytes = 64 * 1024 * 1024           # safe default (v7x-sized VMEM)
    small_vmem = vmem_bytes <= 64 * 1024 * 1024  # v7x heuristic (also: 2 TCs)
    target_rows = 2048 if small_vmem else 4096   # LHS rows per signal per step
    vmem_limit = min(96 << 20, (int(vmem_bytes) * 3) // 4)
    return target_rows, vmem_limit, small_vmem


def _choose_tiling(B, f_pad, target_rows, two_cores):
    """Batch tile bt (need not divide B) and grid length."""
    bt = max(1, min(B, target_rows // f_pad))
    num_tiles = _cdiv(B, bt)
    if two_cores and num_tiles % 2 == 1 and B > 1:
        # Prefer an even grid so the 'parallel' axis balances across 2 TCs,
        # unless it starves the MXU M dimension.
        bt_even = max(1, _cdiv(B, num_tiles + 1))
        if bt_even * f_pad >= 256 or bt == 1:
            bt = bt_even
            num_tiles = _cdiv(B, bt)
    return bt, num_tiles


def sss_loss(x_true, x_pred, alpha=ALPHA):
    """x_true, x_pred: (B, T) float32 waveforms. Returns the scalar loss."""
    B, T = x_true.shape
    assert T >= N_FFT, "need at least one frame"
    n_frames = 1 + (T - N_FFT) // HOP
    f_pad = _round_up(n_frames, 8)                  # sublane-align frame axis

    target_rows, vmem_limit, two_cores = _chip_config()
    bt, num_tiles = _choose_tiling(B, f_pad, target_rows, two_cores)
    b_pad = bt * num_tiles
    rows = bt * f_pad

    # hop == n_fft and center=False -> framing is a plain slice + reshape.
    # Cast to bf16 and zero-pad K to 128 here (zero rows of the DFT matrix are
    # inert); padded frames / padded batches are all-zero and effectively inert.
    def frame(x):
        fr = x[:, :n_frames * N_FFT].reshape(B, n_frames, N_FFT).astype(jnp.bfloat16)
        fr = jnp.pad(fr, ((0, b_pad - B),
                          (0, f_pad - n_frames),
                          (0, K_PAD - N_FFT)))
        return fr.reshape(num_tiles, rows, K_PAD)

    # Interleave per batch tile: [true rows | pred rows] -> one matmul per step.
    stacked = jnp.stack([frame(x_true), frame(x_pred)], axis=1)     # (nt, 2, rows, 128)
    stacked = stacked.reshape(num_tiles * 2 * rows, K_PAD)          # bf16 LHS
    cs = _packed_dft_constant()                                     # (128, 128) bf16

    out = pl.pallas_call(
        _make_kernel(bt, f_pad),
        out_shape=jax.ShapeDtypeStruct((b_pad, 3 * LANES), jnp.float32),
        grid_spec=pltpu.PrefetchScalarGridSpec(
            num_scalar_prefetch=0,
            grid=(num_tiles,),
            in_specs=[
                pl.BlockSpec((2 * rows, K_PAD), lambda g: (g, 0)),
                pl.BlockSpec((K_PAD, LANES), lambda g: (0, 0)),
            ],
            out_specs=pl.BlockSpec((bt, 3 * LANES), lambda g: (g, 0)),
        ),
        compiler_params=pltpu.CompilerParams(
            dimension_semantics=("parallel",),
            vmem_limit_bytes=vmem_limit,
        ),
    )(stacked, cs)

    out = out[:B]                                   # drop padded batches
    sum_a = jnp.sum(out[:, 0:LANES], axis=1)        # lanes duplicated -> 2x sums
    sum_r = jnp.sum(out[:, LANES:2 * LANES], axis=1)
    sum_l1 = jnp.sum(out[:, 2 * LANES:3 * LANES], axis=1)

    diff2 = jnp.maximum(sum_a - 2.0 * sum_r, 0.0)   # sum (St - Sp)^2  (x2)
    ssum2 = sum_a + 2.0 * sum_r                     # sum (St + Sp)^2  (x2)
    converge = jnp.mean(jnp.sqrt(diff2) / jnp.sqrt(ssum2))          # 2x cancels
    # l1 in-kernel = 2*|log St - log Sp| and lanes are duplicated -> /4, then mean.
    log_term = jnp.sum(sum_l1) / (4.0 * B * N_FREQ * n_frames)
    return converge + alpha * log_term


def _sss_loss_ref(x_true, x_pred, alpha=ALPHA):
    """Pure-JAX reference (jnp.fft) mirroring the torch module semantics."""
    B, T = x_true.shape
    n_frames = 1 + (T - N_FFT) // HOP
    idx = HOP * jnp.arange(n_frames)[:, None] + jnp.arange(N_FFT)[None, :]
    k = jnp.arange(N_FFT, dtype=jnp.float32)
    win = 0.5 * (1.0 - jnp.cos(2.0 * jnp.pi * k / N_FFT))
    inv_norm = 1.0 / jnp.sqrt(jnp.sum(win * win))

    def spec(x):
        frames = x[:, idx] * win[None, None, :]           # (B, F, n_fft)
        X = jnp.fft.rfft(frames.astype(jnp.float32), n=N_FFT, axis=-1)
        S = jnp.abs(X) * inv_norm                         # (B, F, freq)
        return jnp.transpose(S, (0, 2, 1)) + EPS          # (B, freq, F)

    St, Sp = spec(x_true), spec(x_pred)
    num = jnp.sqrt(jnp.sum((St - Sp) ** 2, axis=(1, 2)))
    den = jnp.sqrt(jnp.sum((St + Sp) ** 2, axis=(1, 2)))
    converge = jnp.mean(num / den)
    log_term = jnp.mean(jnp.abs(jnp.log(St) - jnp.log(Sp)))
    return converge + alpha * log_term


if __name__ == "__main__":
    B = 2
    T = N_FFT * 8              # -> 8 frames with hop = n_fft, center=False
    key = jax.random.PRNGKey(0)
    k1, k2 = jax.random.split(key)
    x_true = jax.random.normal(k1, (B, T), dtype=jnp.float32)
    x_pred = x_true + 0.1 * jax.random.normal(k2, (B, T), dtype=jnp.float32)

    loss = jax.block_until_ready(jax.jit(sss_loss)(x_true, x_pred))
    ref = jax.block_until_ready(_sss_loss_ref(x_true, x_pred))
    np.testing.assert_allclose(np.array(loss), np.array(ref), rtol=2e-2, atol=2e-3)
    print("KERNEL_OK")
</pallas_src>

<mosaic_0001>
module attributes {stable_mosaic.version = 11 : i64} {
  func.func @kernel(%arg0: i32, %arg1: memref<32x128xbf16, #tpu.memory_space<vmem>>, %arg2: memref<128x128xbf16, #tpu.memory_space<vmem>>, %arg3: memref<2x384xf32, #tpu.memory_space<vmem>>) attributes {dimension_semantics = [#tpu.dimension_semantics<parallel>], iteration_bounds = array<i64: 1>, scalar_prefetch = 0 : i64, scratch_operands = 0 : i64, tpu.core_type = #tpu.core_type<tc>, window_params = [{transform_indices = @transform_0, window_bounds = array<i64: 32, 128>}, {pipeline_mode = #tpu.pipeline_mode<synchronous>, transform_indices = @transform_1, window_bounds = array<i64: 128, 128>}, {transform_indices = @transform_2, window_bounds = array<i64: 2, 384>}]} {
    %c0 = arith.constant 0 : index
    %c0_0 = arith.constant 0 : index
    %0 = vector.load %arg2[%c0, %c0_0] : memref<128x128xbf16, #tpu.memory_space<vmem>>, vector<128x128xbf16>
    %c0_1 = arith.constant 0 : index
    %c0_2 = arith.constant 0 : index
    %1 = vector.load %arg1[%c0_1, %c0_2] : memref<32x128xbf16, #tpu.memory_space<vmem>>, vector<32x128xbf16>
    %cst = arith.constant dense<0.000000e+00> : vector<32x128xf32>
    %2 = tpu.matmul %1, %0, %cst {dimension_numbers = #tpu.dot_dimension_numbers<[1], [0], [0], [1], [0, 0, 1, 1], [], []>} : vector<32x128xbf16>, vector<128x128xbf16>, vector<32x128xf32> -> vector<32x128xf32>
    %3 = arith.mulf %2, %2 : vector<32x128xf32>
    %c64_i32 = arith.constant 64 : i32
    %4 = tpu.dynamic_rotate %3 by %c64_i32 dim 1 : vector<32x128xf32>, i32 -> vector<32x128xf32>
    %5 = arith.addf %3, %4 : vector<32x128xf32>
    %cst_3 = arith.constant 9.99999982E-15 : f32
    %6 = vector.broadcast %cst_3 : f32 to vector<32x128xf32>
    %7 = arith.addf %5, %6 : vector<32x128xf32>
    %8 = vector.extract_strided_slice %7 {offsets = [0, 0], sizes = [16, 128], strides = [1, 1]} : vector<32x128xf32> to vector<16x128xf32>
    %9 = vector.extract_strided_slice %7 {offsets = [16, 0], sizes = [16, 128], strides = [1, 1]} : vector<32x128xf32> to vector<16x128xf32>
    %10 = arith.addf %8, %9 : vector<16x128xf32>
    %11 = arith.mulf %8, %9 : vector<16x128xf32>
    %12 = math.sqrt %11 : vector<16x128xf32>
    %13 = math.log %8 : vector<16x128xf32>
    %14 = math.log %9 : vector<16x128xf32>
    %15 = arith.subf %13, %14 : vector<16x128xf32>
    %16 = math.absf %15 : vector<16x128xf32>
    %17 = vector.shape_cast %10 : vector<16x128xf32> to vector<2x8x128xf32>
    %cst_4 = arith.constant dense<0.000000e+00> : vector<2x128xf32>
    %18 = vector.multi_reduction <add>, %17, %cst_4 [1] : vector<2x8x128xf32> to vector<2x128xf32>
    %c0_5 = arith.constant 0 : index
    %c0_6 = arith.constant 0 : index
    %19 = vector.load %arg3[%c0_5, %c0_6] : memref<2x384xf32, #tpu.memory_space<vmem>>, vector<2x128xf32>
    tpu.vector_store %arg3[%c0_5, %c0_6], %18 {strides = array<i32>} : memref<2x384xf32, #tpu.memory_space<vmem>>, vector<2x128xf32>,
    %20 = vector.shape_cast %12 : vector<16x128xf32> to vector<2x8x128xf32>
    %cst_7 = arith.constant dense<0.000000e+00> : vector<2x128xf32>
    %21 = vector.multi_reduction <add>, %20, %cst_7 [1] : vector<2x8x128xf32> to vector<2x128xf32>
    %c0_8 = arith.constant 0 : index
    %c128 = arith.constant 128 : index
    %22 = vector.load %arg3[%c0_8, %c128] : memref<2x384xf32, #tpu.memory_space<vmem>>, vector<2x128xf32>
    tpu.vector_store %arg3[%c0_8, %c128], %21 {strides = array<i32>} : memref<2x384xf32, #tpu.memory_space<vmem>>, vector<2x128xf32>,
    %23 = vector.shape_cast %16 : vector<16x128xf32> to vector<2x8x128xf32>
    %cst_9 = arith.constant dense<0.000000e+00> : vector<2x128xf32>
    %24 = vector.multi_reduction <add>, %23, %cst_9 [1] : vector<2x8x128xf32> to vector<2x128xf32>
    %c0_10 = arith.constant 0 : index
    %c256 = arith.constant 256 : index
    %25 = vector.load %arg3[%c0_10, %c256] : memref<2x384xf32, #tpu.memory_space<vmem>>, vector<2x128xf32>
    tpu.vector_store %arg3[%c0_10, %c256], %24 {strides = array<i32>} : memref<2x384xf32, #tpu.memory_space<vmem>>, vector<2x128xf32>,
    return
  }
  func.func @transform_0(%arg0: i32) -> (i32, i32) {
    %c0_i32 = arith.constant 0 : i32
    %c0_i32_0 = arith.constant 0 : i32
    return %arg0, %c0_i32 : i32, i32
  }
  func.func @transform_1(%arg0: i32) -> (i32, i32) {
    %c0_i32 = arith.constant 0 : i32
    %c0_i32_0 = arith.constant 0 : i32
    %c0_i32_1 = arith.constant 0 : i32
    return %c0_i32, %c0_i32_0 : i32, i32
  }
  func.func @transform_2(%arg0: i32) -> (i32, i32) {
    %c0_i32 = arith.constant 0 : i32
    %c0_i32_0 = arith.constant 0 : i32
    return %arg0, %c0_i32 : i32, i32
  }
}

</mosaic_0001>

<bundles_post_ra>
// kernel: sss_loss.1
= control target key start
LH: loop header
LB: loop body
LE: loop exit
PB: predicated region body
PF: predicated region fallthrough
CT: control target
= control target key end

     0   :  { %s376_s29 = smov 64   ;;  %v377_v37 = vmov 1983009808   ;;  %v208_v39 = vlaneseq  ;;  %vm224_vm2 = vcmask 1041409   ;;  %vm226_vm3 = vcmask 1043459   ;;  %s452_s1 = inlined_call_operand.vmem [shape: bf16[128,128], index: 1, kind: input, shape index: {}]   ;;  %s453_s0 = inlined_call_operand.vmem [shape: bf16[32,128], index: 0, kind: input, shape index: {}]   ;;  %s454_s2 = inlined_call_operand.vmem [shape: f32[2,384], index: 2, kind: output, shape index: {}]  }
   0x1   :  { %v354_v0 = vld [vmem:[%s452_s1 + $0x38] sm:$0xff]   ;;  %v355_v1 = vld [vmem:[%s452_s1 + $0x30] sm:$0xff]   ;;  %v356_v2 = vld [vmem:[%s452_s1 + $0x28] sm:$0xff]   ;;  %v206_v38 = vunpack.c.l.s4 %v377_v37  ;;  %vm228_vm4 = vcmask 1045509   ;;  %vm230_vm6 = vcmask 1047559  }
   0x2   :  { %332 = vmatprep.subr.bf16.mxu0 %v354_v0  ;;  %v357_v3 = vld [vmem:[%s452_s1 + $0x20] sm:$0xff]   ;;  %v358_v5 = vld [vmem:[%s452_s1 + $0x18] sm:$0xff]   ;;  %v359_v6 = vld [vmem:[%s452_s1 + $0x10] sm:$0xff]   ;;  %v209_v45 = vshrl.u32 %v208_v39, 7 }
   0x3   :  { %333 = vmatpush3.bf16.msra.mxu0 %v354_v0  ;;  %v362_v4 = vld [vmem:[%s453_s0] sm:$0xff]   ;;  %v360_v7 = vld [vmem:[%s452_s1 + $0x8] sm:$0xff]   ;;  %v207_v44 = vunpack.c.0.s8 %v206_v38 }
   0x4   :  { %334 = vmatprep.subr.bf16.mxu0 %v355_v1  ;;  %348 = vmatprep.mubr.bf16.mxu0 %v362_v4  ;;  %v361_v8 = vld [vmem:[%s452_s1] sm:$0xff]   ;;  %v363_v9 = vld [vmem:[%s453_s0 + $0x8] sm:$0xff]  }
   0x5   :  { %v423_v54 = vsub.s32 %v207_v44, %v209_v45 }
   0x7   :  { %335 = vmatpush3.bf16.msra.mxu0 %v355_v1 }
   0x8   :  { %336 = vmatprep.subr.bf16.mxu0 %v356_v2 }
   0xb   :  { %337 = vmatpush3.bf16.msra.mxu0 %v356_v2 }
   0xc   :  { %338 = vmatprep.subr.bf16.mxu0 %v357_v3 }
   0xf   :  { %339 = vmatpush3.bf16.msra.mxu0 %v357_v3 }
  0x10   :  { %340 = vmatprep.subr.bf16.mxu0 %v358_v5 }
  0x13   :  { %341 = vmatpush3.bf16.msra.mxu0 %v358_v5 }
  0x14   :  { %342 = vmatprep.subr.bf16.mxu0 %v359_v6 }
  0x17   :  { %343 = vmatpush3.bf16.msra.mxu0 %v359_v6 }
  0x18   :  { %344 = vmatprep.subr.bf16.mxu0 %v360_v7 }
  0x1b   :  { %345 = vmatpush3.bf16.msra.mxu0 %v360_v7 }
  0x1c   :  { %346 = vmatprep.subr.bf16.mxu0 %v361_v8 }
  0x1f   :  { %347 = vmatpush3.bf16.msra.mxu0 %v361_v8 }
  0x22   :  { %349 = vmatmul.mubr.bf16.vlgmr.msra.gmra.mxu0 %v363_v9 }
  0xe2   :  { %v350_v10 = vpop.f32.mrf.mxu0 }
  0xe3   :  { %v143_v15 = vmul.f32 %v350_v10, %v350_v10 }
  0xe4   :  { %v126_v11 = vpop.f32.mrf.mxu0 }
  0xe5   :  { %v141_v12 = vmul.f32 %v126_v11, %v126_v11 }
  0xe6   :  { %v351_v13 = vpop.f32.mrf.mxu0 }
  0xe7   :  { %145 = vrot.lane.b32.xlu1 %v141_v12, %s376_s29  ;;  %v144_v17 = vmul.f32 %v351_v13, %v351_v13 }
  0xe8   :  { %v129_v14 = vpop.f32.mrf.mxu0 }
  0xe9   :  { %v142_v16 = vmul.f32 %v129_v14, %v129_v14 }
  0xeb   :  { %149 = vrot.lane.b32.xlu1 %v143_v15, %s376_s29  ;;  %147 = vrot.lane.b32.xlu0 %v142_v16, %s376_s29 }
  0xef   :  { %151 = vrot.lane.b32.xlu0 %v144_v17, %s376_s29 }
 0x159   :  { %v146_v18 = vpop.permute.xlu1 %145 }
 0x15a   :  { %v153_v19 = vadd.f32 %v146_v18, %v141_v12 }
 0x15c   :  { %v157_v20 = vadd.f32 1e-14, %v153_v19 }
 0x15d   :  { %v150_v21 = vpop.permute.xlu1 %149  ;;  %v148_v22 = vpop.permute.xlu0 %147 }
 0x15e   :  { %v155_v23 = vadd.f32 %v150_v21, %v143_v15  ;;  %v154_v24 = vadd.f32 %v148_v22, %v142_v16  ;;  %364 = vlog2.f32 %v157_v20 }
 0x160   :  { %v159_v25 = vadd.f32 1e-14, %v155_v23  ;;  %v158_v26 = vadd.f32 1e-14, %v154_v24 }
 0x161   :  { %v152_v27 = vpop.permute.xlu0 %151 }
 0x162   :  { %v161_v28 = vadd.f32 %v159_v25, %v157_v20  ;;  %v163_v29 = vmul.f32 %v159_v25, %v157_v20  ;;  %366 = vlog2.f32 %v159_v25  ;;  %v156_v30 = vadd.f32 %v152_v27, %v144_v17 }
 0x164   :  { %368 = vrsqrt.f32 %v163_v29  ;;  %v191_v31 = vrot.slane %v161_v28, 4  ;;  %v160_v32 = vadd.f32 1e-14, %v156_v30  ;;  %vm167_vm0 = vcmp.eq.f32.partialorder %v163_v29, inf }
 0x165   :  { %370 = vlog2.f32 %v158_v26  ;;  %vm169_vm1 = vcmp.eq.f32.partialorder %v163_v29, 0.0  ;;  %v170_v58 = vand.u32 2147483648, %v163_v29 }
 0x166   :  { %v192_v33 = vadd.f32 %v191_v31, %v161_v28  ;;  %v162_v34 = vadd.f32 %v160_v32, %v158_v26  ;;  %v164_v35 = vmul.f32 %v160_v32, %v158_v26  ;;  %372 = vlog2.f32 %v160_v32 }
 0x168   :  { %v193_v36 = vrot.slane %v192_v33, 2  ;;  %374 = vrsqrt.f32 %v164_v35  ;;  %v197_v40 = vrot.slane %v162_v34, 4  ;;  %vm174_vm5 = vcmp.eq.f32.partialorder %v164_v35, inf }
 0x169   :  { %v177_v8 = vand.u32 2147483648, %v164_v35  ;;  %vm176_vm7 = vcmp.eq.f32.partialorder %v164_v35, 0.0 }
 0x16a   :  { %v194_v41 = vadd.f32 %v193_v36, %v192_v33  ;;  %v198_v42 = vadd.f32 %v197_v40, %v162_v34 }
 0x16b   :  { %v365_v43 = vpop.eup %364 }
 0x16c   :  { %v199_v46 = vrot.slane %v198_v42, 2  ;;  %v180_v48 = vmul.f32 0.6931472, %v365_v43  ;;  %v195_v50 = vrot.slane %v194_v41, 1 }
 0x16e   :  { %v200_v51 = vadd.f32 %v199_v46, %v198_v42  ;;  %v196_v62 = vadd.f32 %v195_v50, %v194_v41 }
 0x16f   :  { %v367_v47 = vpop.eup %366 }
 0x170   :  { %v184_v49 = vmul.f32 0.6931472, %v367_v47  ;;  %v201_v57 = vrot.slane %v200_v51, 1  ;;  %v211_v10 = vrot.slane %v196_v62, %v423_v54 }
 0x171   :  { %v369_v52 = vpop.eup %368 }
 0x172   :  { %v371_v53 = vpop.eup %370  ;;  %v166_v55 = vmul.f32 %v369_v52, %v163_v29  ;;  %v187_v56 = vsub.f32 %v180_v48, %v184_v49  ;;  %v202_v63 = vadd.f32 %v201_v57, %v200_v51 }
 0x173   :  { %v373_v59 = vpop.eup %372  ;;  %v182_v1 = vmul.f32 0.6931472, %v371_v53 }
 0x174   :  { %v168_v60 = vsel %vm167_vm0, %v163_v29, %v166_v55  ;;  %v189_v61 = vand.u32 2147483647, %v187_v56  ;;  %v186_v2 = vmul.f32 0.6931472, %v373_v59  ;;  %v218_v6 = vrot.slane %v202_v63, %v423_v54 }
 0x175   :  { %v171_v0 = vsel %vm169_vm1, %v170_v58, %v168_v60  ;;  %v375_v3 = vpop.eup %374 }
 0x176   :  { %v234_v4 = vrot.slane %v171_v0, 4  ;;  %v271_v5 = vrot.slane %v189_v61, 4  ;;  %v173_v7 = vmul.f32 %v375_v3, %v164_v35  ;;  %v188_v9 = vsub.f32 %v182_v1, %v186_v2 }
 0x177   :  { %v223_v13 = vrot.slane %v218_v6, 7 }
 0x178   :  { %v235_v11 = vadd.f32 %v234_v4, %v171_v0  ;;  %v272_v12 = vadd.f32 %v271_v5, %v189_v61  ;;  %v175_v14 = vsel %vm174_vm5, %v164_v35, %v173_v7  ;;  %v190_v15 = vand.u32 2147483647, %v188_v9 }
 0x179   :  { %v178_v18 = vsel %vm176_vm7, %v177_v8, %v175_v14  ;;  %v225_v19 = vsel %vm224_vm2, %v223_v13, %v211_v10 }
 0x17a   :  { %v236_v16 = vrot.slane %v235_v11, 2  ;;  %v273_v17 = vrot.slane %v272_v12, 2  ;;  %v227_v20 = vsel %vm226_vm3, %v223_v13, %v225_v19  ;;  %v240_v21 = vrot.slane %v178_v18, 4 }
 0x17b   :  { %v277_v22 = vrot.slane %v190_v15, 4  ;;  %v229_v24 = vsel %vm228_vm4, %v223_v13, %v227_v20 }
 0x17c   :  { %v237_v23 = vadd.f32 %v236_v16, %v235_v11  ;;  %v274_v25 = vadd.f32 %v273_v17, %v272_v12  ;;  %v231_v26 = vsel %vm230_vm6, %v223_v13, %v229_v24  ;;  %v241_v27 = vadd.f32 %v240_v21, %v178_v18 }
 0x17d   :  { %v278_v28 = vadd.f32 %v277_v22, %v190_v15  ;;  %233 = vst [vmem:[%s454_s2] sm:$0x3] %v231_v26 }
 0x17e   :  { %v242_v29 = vrot.slane %v241_v27, 2  ;;  %v238_v31 = vrot.slane %v237_v23, 1  ;;  %v275_v32 = vrot.slane %v274_v25, 1 }
 0x17f   :  { %v279_v30 = vrot.slane %v278_v28, 2 }
 0x180   :  { %v243_v33 = vadd.f32 %v242_v29, %v241_v27  ;;  %v239_v37 = vadd.f32 %v238_v31, %v237_v23  ;;  %v276_v38 = vadd.f32 %v275_v32, %v274_v25 }
 0x181   :  { %v280_v34 = vadd.f32 %v279_v30, %v278_v28 }
 0x182   :  { %v244_v35 = vrot.slane %v243_v33, 1  ;;  %v291_v43 = vrot.slane %v276_v38, %v423_v54  ;;  %v254_v44 = vrot.slane %v239_v37, %v423_v54 }
 0x183   :  { %v281_v36 = vrot.slane %v280_v34, 1 }
 0x184   :  { %v245_v39 = vadd.f32 %v244_v35, %v243_v33 }
 0x185   :  { %v282_v40 = vadd.f32 %v281_v36, %v280_v34 }
 0x186   :  { %v261_v41 = vrot.slane %v245_v39, %v423_v54 }
 0x187   :  { %v298_v42 = vrot.slane %v282_v40, %v423_v54 }
 0x188   :  { %v264_v45 = vrot.slane %v261_v41, 7 }
 0x189   :  { %v301_v46 = vrot.slane %v298_v42, 7 }
 0x18a   :  { %v265_v47 = vsel %vm224_vm2, %v264_v45, %v254_v44 }
 0x18b   :  { %v302_v48 = vsel %vm224_vm2, %v301_v46, %v291_v43  ;;  %v266_v49 = vsel %vm226_vm3, %v264_v45, %v265_v47 }
 0x18c   :  { %v303_v50 = vsel %vm226_vm3, %v301_v46, %v302_v48  ;;  %v267_v51 = vsel %vm228_vm4, %v264_v45, %v266_v49 }
 0x18d   :  { %v304_v52 = vsel %vm228_vm4, %v301_v46, %v303_v50  ;;  %v268_v53 = vsel %vm230_vm6, %v264_v45, %v267_v51 }
 0x18e   :  { %v305_v55 = vsel %vm230_vm6, %v301_v46, %v304_v52  ;;  %270 = vst [vmem:[%s454_s2 + $0x2] sm:$0x3] %v268_v53 }
 0x18f   :  { %307 = vst [vmem:[%s454_s2 + $0x4] sm:$0x3] %v305_v55 }

</bundles_post_ra>
